<compile_context>
chip_gen: v7x
topology: tpu7x:2x2x1
jax: 0.10.0
libtpu: 0.0.40
codegen_flags: <defaults>
</compile_context>

<pallas_src>
import jax
import jax.numpy as jnp
from jax.experimental import pallas as pl
from jax.experimental.pallas import tpu as pltpu


def _round_up(x, m):
    return ((x + m - 1) // m) * m


# ----------------------------------------------------------------------------
# Fused kernel: conv-as-matmul + bias + ReLU + global-avg-pool + FC head
#   patches : [B, HW_pad, K]      bf16   (K = 9*Cin)
#   w_conv  : [K, Cmid]           bf16
#   b_conv  : [1, Cmid]           f32
#   w_fc    : [Cmid, NC_pad]      f32    (lane-padded to 128)
#   b_fc    : [1, NC_pad]         f32
#   out     : [B, 1, NC_pad]      f32
# grid = (B, HW_pad // tile_hw); per-batch pooled accumulator in VMEM scratch.
# ----------------------------------------------------------------------------
def _make_fused_kernel(hw_total, hw_pad):
    inv_hw = 1.0 / float(hw_total)
    n_pad_rows = float(hw_pad - hw_total)   # all-zero im2col rows (static)

    def kernel(p_ref, wc_ref, bc_ref, wf_ref, bf_ref, o_ref, acc_ref):
        t = pl.program_id(1)

        @pl.when(t == 0)
        def _init():
            acc_ref[...] = jnp.zeros_like(acc_ref)

        # conv tile: [tile_hw, K] (bf16) @ [K, Cmid] (bf16) -> f32 on MXU
        conv = jnp.dot(p_ref[0], wc_ref[...],
                       preferred_element_type=jnp.float32)
        feat = jnp.maximum(conv + bc_ref[...], 0.0)            # f32 epilogue
        acc_ref[...] += jnp.sum(feat, axis=0, keepdims=True)   # [1, Cmid]

        @pl.when(t == pl.num_programs(1) - 1)
        def _finish():
            pooled = acc_ref[...]
            if n_pad_rows > 0.0:
                # Each zero-padded row contributed exactly relu(b_conv); remove
                # that once here instead of masking every tile in the hot loop.
                pooled = pooled - n_pad_rows * jnp.maximum(bc_ref[...], 0.0)
            pooled = pooled * inv_hw                            # [1, Cmid]
            logits = jnp.dot(pooled, wf_ref[...],
                             preferred_element_type=jnp.float32) + bf_ref[...]
            o_ref[0] = logits                                   # [1, NC_pad]

    return kernel


def fused_forward_pallas(patches, w_conv, b_conv, w_fc, b_fc, *,
                         hw_total, tile_hw):
    B, hw_pad, K = patches.shape
    Cmid = w_conv.shape[1]
    NC_pad = w_fc.shape[1]
    grid = (B, hw_pad // tile_hw)

    kernel = _make_fused_kernel(hw_total, hw_pad)

    out = pl.pallas_call(
        kernel,
        out_shape=jax.ShapeDtypeStruct((B, 1, NC_pad), jnp.float32),
        grid_spec=pltpu.PrefetchScalarGridSpec(
            num_scalar_prefetch=0,
            grid=grid,
            in_specs=[
                pl.BlockSpec((1, tile_hw, K), lambda b, t: (b, t, 0)),
                pl.BlockSpec((K, Cmid), lambda b, t: (0, 0)),
                pl.BlockSpec((1, Cmid), lambda b, t: (0, 0)),
                pl.BlockSpec((Cmid, NC_pad), lambda b, t: (0, 0)),
                pl.BlockSpec((1, NC_pad), lambda b, t: (0, 0)),
            ],
            out_specs=pl.BlockSpec((1, 1, NC_pad), lambda b, t: (b, 0, 0)),
            scratch_shapes=[pltpu.VMEM((1, Cmid), jnp.float32)],
        ),
        compiler_params=pltpu.CompilerParams(
            dimension_semantics=("parallel", "arbitrary")),
    )(patches, w_conv, b_conv, w_fc, b_fc)
    return out


# ----------------------------------------------------------------------------
# Glue: im2col patch extraction (3x3, pad=1, stride=1) in NHWC.
# K layout is (ky, kx, Cin) — tap-major, channels innermost per tap.
# ----------------------------------------------------------------------------
def im2col_3x3(x_nhwc):
    B, H, W, C = x_nhwc.shape
    xp = jnp.pad(x_nhwc, ((0, 0), (1, 1), (1, 1), (0, 0)))
    views = [xp[:, dy:dy + H, dx:dx + W, :]
             for dy in range(3) for dx in range(3)]
    patches = jnp.concatenate(views, axis=-1)          # [B, H, W, 9*C]
    return patches.reshape(B, H * W, 9 * C)


# ----------------------------------------------------------------------------
# Full forward (NCHW in, [B, num_classes] out — matches PyTorch semantics)
# ----------------------------------------------------------------------------
def model_called_forward(x_nchw, params, *, tile_hw=1024):
    w_conv, b_conv, w_fc, b_fc = params
    B, C, H, W = x_nchw.shape
    Cmid = w_conv.shape[1]
    NC = w_fc.shape[1]
    HW = H * W

    x_nhwc = jnp.transpose(x_nchw, (0, 2, 3, 1))       # NCHW -> NHWC
    patches = im2col_3x3(x_nhwc)                       # [B, HW, 9*C]

    # bf16 operands for the MXU; everything downstream stays f32.
    patches = patches.astype(jnp.bfloat16)
    w_conv_b = w_conv.astype(jnp.bfloat16)

    # Tile the spatial axis; zero-pad to a multiple of the tile.  Padded rows
    # are corrected analytically inside the kernel (no per-tile mask).
    tile = min(tile_hw, _round_up(HW, 8))
    hw_pad = _round_up(HW, tile)
    if hw_pad != HW:
        patches = jnp.pad(patches, ((0, 0), (0, hw_pad - HW), (0, 0)))

    # Lane-dense FC head: pad num_classes to 128 so the final store is a full
    # unmasked vst; slice the real classes back out afterwards.
    NC_pad = _round_up(NC, 128)
    w_fc_p = jnp.pad(w_fc.astype(jnp.float32), ((0, 0), (0, NC_pad - NC)))
    b_fc_p = jnp.pad(b_fc.reshape(1, NC).astype(jnp.float32),
                     ((0, 0), (0, NC_pad - NC)))

    out = fused_forward_pallas(
        patches, w_conv_b,
        b_conv.reshape(1, Cmid).astype(jnp.float32),
        w_fc_p, b_fc_p,
        hw_total=HW, tile_hw=tile)                     # [B, 1, NC_pad]
    return out[:, 0, :NC]                              # [B, NC]


def init_params(key, c_in=4, c_mid=32, num_classes=9):
    k1, k2, k3, k4 = jax.random.split(key, 4)
    w_conv = jax.random.normal(k1, (9 * c_in, c_mid), jnp.float32) * 0.05
    b_conv = jax.random.normal(k2, (c_mid,), jnp.float32) * 0.01
    w_fc = jax.random.normal(k3, (c_mid, num_classes), jnp.float32) * 0.05
    b_fc = jax.random.normal(k4, (num_classes,), jnp.float32) * 0.01
    return w_conv, b_conv, w_fc, b_fc


if __name__ == "__main__":
    key = jax.random.PRNGKey(0)
    kx, kp = jax.random.split(key)

    B, C, H, W = 2, 4, 16, 16
    x = jax.random.normal(kx, (B, C, H, W), jnp.float32)
    params = init_params(kp, c_in=C, c_mid=32, num_classes=9)

    logits = jax.jit(model_called_forward)(x, params)
    jax.block_until_ready(logits)

    assert logits.shape == (B, 9), logits.shape
    assert logits.dtype == jnp.float32
    print("KERNEL_OK")
</pallas_src>

<mosaic_0001>
module attributes {stable_mosaic.version = 11 : i64} {
  func.func @kernel(%arg0: i32, %arg1: i32, %arg2: memref<1x256x36xbf16, #tpu.memory_space<vmem>>, %arg3: memref<36x32xbf16, #tpu.memory_space<vmem>>, %arg4: memref<1x32xf32, #tpu.memory_space<vmem>>, %arg5: memref<32x128xf32, #tpu.memory_space<vmem>>, %arg6: memref<1x128xf32, #tpu.memory_space<vmem>>, %arg7: memref<1x1x128xf32, #tpu.memory_space<vmem>>, %arg8: memref<1x32xf32, #tpu.memory_space<vmem>>) attributes {dimension_semantics = [#tpu.dimension_semantics<parallel>, #tpu.dimension_semantics<arbitrary>], iteration_bounds = array<i64: 2, 1>, scalar_prefetch = 0 : i64, scratch_operands = 1 : i64, tpu.core_type = #tpu.core_type<tc>, window_params = [{transform_indices = @transform_0, window_bounds = array<i64: 1, 256, 36>}, {pipeline_mode = #tpu.pipeline_mode<synchronous>, transform_indices = @transform_1, window_bounds = array<i64: 36, 32>}, {pipeline_mode = #tpu.pipeline_mode<synchronous>, transform_indices = @transform_2, window_bounds = array<i64: 1, 32>}, {pipeline_mode = #tpu.pipeline_mode<synchronous>, transform_indices = @transform_3, window_bounds = array<i64: 32, 128>}, {pipeline_mode = #tpu.pipeline_mode<synchronous>, transform_indices = @transform_4, window_bounds = array<i64: 1, 128>}, {transform_indices = @transform_5, window_bounds = array<i64: 1, 1, 128>}]} {
    %c0_i32 = arith.constant 0 : i32
    %0 = arith.cmpi eq, %arg1, %c0_i32 : i32
    %1 = arith.extui %0 : i1 to i32
    %c0_i32_0 = arith.constant 0 : i32
    %2 = arith.cmpi ne, %1, %c0_i32_0 : i32
    scf.if %2 {
      %cst_15 = arith.constant 0.000000e+00 : f32
      %20 = vector.broadcast %cst_15 : f32 to vector<1x32xf32>
      %c0_16 = arith.constant 0 : index
      %c0_17 = arith.constant 0 : index
      %21 = vector.load %arg8[%c0_16, %c0_17] : memref<1x32xf32, #tpu.memory_space<vmem>>, vector<1x32xf32>
      tpu.vector_store %arg8[%c0_16, %c0_17], %20 {strides = array<i32>} : memref<1x32xf32, #tpu.memory_space<vmem>>, vector<1x32xf32>,
    } else {
    }
    %c0 = arith.constant 0 : index
    %c0_1 = arith.constant 0 : index
    %c0_2 = arith.constant 0 : index
    %3 = vector.load %arg2[%c0, %c0_1, %c0_2] : memref<1x256x36xbf16, #tpu.memory_space<vmem>>, vector<1x256x36xbf16>
    %4 = vector.shape_cast %3 : vector<1x256x36xbf16> to vector<256x36xbf16>
    %c0_3 = arith.constant 0 : index
    %c0_4 = arith.constant 0 : index
    %5 = vector.load %arg3[%c0_3, %c0_4] : memref<36x32xbf16, #tpu.memory_space<vmem>>, vector<36x32xbf16>
    %cst = arith.constant dense<0.000000e+00> : vector<256x32xf32>
    %6 = tpu.matmul %4, %5, %cst {dimension_numbers = #tpu.dot_dimension_numbers<[1], [0], [0], [1], [0, 0, 1, 1], [], []>} : vector<256x36xbf16>, vector<36x32xbf16>, vector<256x32xf32> -> vector<256x32xf32>
    %c0_5 = arith.constant 0 : index
    %c0_6 = arith.constant 0 : index
    %7 = vector.load %arg4[%c0_5, %c0_6] : memref<1x32xf32, #tpu.memory_space<vmem>>, vector<1x32xf32>
    %8 = vector.broadcast %7 : vector<1x32xf32> to vector<256x32xf32>
    %9 = arith.addf %6, %8 : vector<256x32xf32>
    %cst_7 = arith.constant 0.000000e+00 : f32
    %10 = vector.broadcast %cst_7 : f32 to vector<256x32xf32>
    %11 = arith.maximumf %9, %10 : vector<256x32xf32>
    %c0_8 = arith.constant 0 : index
    %c0_9 = arith.constant 0 : index
    %12 = vector.load %arg8[%c0_8, %c0_9] : memref<1x32xf32, #tpu.memory_space<vmem>>, vector<1x32xf32>
    %cst_10 = arith.constant dense<0.000000e+00> : vector<32xf32>
    %13 = vector.multi_reduction <add>, %11, %cst_10 [0] : vector<256x32xf32> to vector<32xf32>
    %14 = vector.shape_cast %13 : vector<32xf32> to vector<1x32xf32>
    %15 = arith.addf %12, %14 : vector<1x32xf32>
    %c0_11 = arith.constant 0 : index
    %c0_12 = arith.constant 0 : index
    %16 = vector.load %arg8[%c0_11, %c0_12] : memref<1x32xf32, #tpu.memory_space<vmem>>, vector<1x32xf32>
    tpu.vector_store %arg8[%c0_11, %c0_12], %15 {strides = array<i32>} : memref<1x32xf32, #tpu.memory_space<vmem>>, vector<1x32xf32>,
    %c0_i32_13 = arith.constant 0 : i32
    %17 = arith.cmpi eq, %arg1, %c0_i32_13 : i32
    %18 = arith.extui %17 : i1 to i32
    %c0_i32_14 = arith.constant 0 : i32
    %19 = arith.cmpi ne, %18, %c0_i32_14 : i32
    scf.if %19 {
      %c0_15 = arith.constant 0 : index
      %c0_16 = arith.constant 0 : index
      %20 = vector.load %arg8[%c0_15, %c0_16] : memref<1x32xf32, #tpu.memory_space<vmem>>, vector<1x32xf32>
      %cst_17 = arith.constant 3.906250e-03 : f32
      %21 = vector.broadcast %cst_17 : f32 to vector<1x32xf32>
      %22 = arith.mulf %20, %21 : vector<1x32xf32>
      %c0_18 = arith.constant 0 : index
      %c0_19 = arith.constant 0 : index
      %23 = vector.load %arg5[%c0_18, %c0_19] : memref<32x128xf32, #tpu.memory_space<vmem>>, vector<32x128xf32>
      %cst_20 = arith.constant dense<0.000000e+00> : vector<1x128xf32>
      %24 = tpu.matmul %22, %23, %cst_20 {dimension_numbers = #tpu.dot_dimension_numbers<[1], [0], [0], [1], [0, 0, 1, 1], [], []>} : vector<1x32xf32>, vector<32x128xf32>, vector<1x128xf32> -> vector<1x128xf32>
      %c0_21 = arith.constant 0 : index
      %c0_22 = arith.constant 0 : index
      %25 = vector.load %arg6[%c0_21, %c0_22] : memref<1x128xf32, #tpu.memory_space<vmem>>, vector<1x128xf32>
      %26 = arith.addf %24, %25 : vector<1x128xf32>
      %c0_23 = arith.constant 0 : index
      %c0_24 = arith.constant 0 : index
      %c0_25 = arith.constant 0 : index
      %27 = vector.load %arg7[%c0_23, %c0_24, %c0_25] : memref<1x1x128xf32, #tpu.memory_space<vmem>>, vector<1x1x128xf32>
      %28 = vector.shape_cast %27 : vector<1x1x128xf32> to vector<1x128xf32>
      %29 = vector.shape_cast %26 : vector<1x128xf32> to vector<1x1x128xf32>
      tpu.vector_store %arg7[%c0_23, %c0_24, %c0_25], %29 {strides = array<i32>} : memref<1x1x128xf32, #tpu.memory_space<vmem>>, vector<1x1x128xf32>,
    } else {
    }
    return
  }
  func.func @transform_0(%arg0: i32, %arg1: i32) -> (i32, i32, i32) {
    %c0_i32 = arith.constant 0 : i32
    %c0_i32_0 = arith.constant 0 : i32
    return %arg0, %arg1, %c0_i32 : i32, i32, i32
  }
  func.func @transform_1(%arg0: i32, %arg1: i32) -> (i32, i32) {
    %c0_i32 = arith.constant 0 : i32
    %c0_i32_0 = arith.constant 0 : i32
    %c0_i32_1 = arith.constant 0 : i32
    return %c0_i32, %c0_i32_0 : i32, i32
  }
  func.func @transform_2(%arg0: i32, %arg1: i32) -> (i32, i32) {
    %c0_i32 = arith.constant 0 : i32
    %c0_i32_0 = arith.constant 0 : i32
    %c0_i32_1 = arith.constant 0 : i32
    return %c0_i32, %c0_i32_0 : i32, i32
  }
  func.func @transform_3(%arg0: i32, %arg1: i32) -> (i32, i32) {
    %c0_i32 = arith.constant 0 : i32
    %c0_i32_0 = arith.constant 0 : i32
    %c0_i32_1 = arith.constant 0 : i32
    return %c0_i32, %c0_i32_0 : i32, i32
  }
  func.func @transform_4(%arg0: i32, %arg1: i32) -> (i32, i32) {
    %c0_i32 = arith.constant 0 : i32
    %c0_i32_0 = arith.constant 0 : i32
    %c0_i32_1 = arith.constant 0 : i32
    return %c0_i32, %c0_i32_0 : i32, i32
  }
  func.func @transform_5(%arg0: i32, %arg1: i32) -> (i32, i32, i32) {
    %c0_i32 = arith.constant 0 : i32
    %c0_i32_0 = arith.constant 0 : i32
    %c0_i32_1 = arith.constant 0 : i32
    return %arg0, %c0_i32, %c0_i32_0 : i32, i32, i32
  }
}

</mosaic_0001>

<bundles_post_ra>
// kernel: model_called_forward.1
= control target key start
LH: loop header
LB: loop body
LE: loop exit
PB: predicated region body
PF: predicated region fallthrough
CT: control target
= control target key end

     0   :  { %10 = vsyncpa [#allocation4], 0  ;;  %s1486_s0 = inlined_call_operand.vmem [shape: bf16[2,256,36], index: 0, kind: input, shape index: {}]   ;;  %s1487_s1 = inlined_call_operand.vmem [shape: bf16[36,32], index: 1, kind: input, shape index: {}]   ;;  %s1488_s2 = inlined_call_operand.vmem [shape: f32[1,32], index: 2, kind: input, shape index: {}]   ;;  %s1489_s3 = inlined_call_operand.vmem [shape: f32[32,128], index: 3, kind: input, shape index: {}]   ;;  %s1490_s4 = inlined_call_operand.vmem [shape: f32[1,128], index: 4, kind: input, shape index: {}]   ;;  %s1491_s5 = inlined_call_operand.hbm [shape: f32[2,1,128], index: 5, kind: output, shape index: {}]  }
   0x1   :  { %12 = vsyncpa [#allocation4 + $0x1], 0  ;;  %s1208_s18 = smov 0   ;;  %s1210_s19 = smov 0  }
   0x2   :  { %s1212_s20 = smov 0   ;;  %s1214_s21 = smov 0  }
   0x3   :  { %s1216_s22 = smov 0   ;;  %s1218_s23 = smov 0  }
   0x4 LB: > { %s882_s24 = sadd.s32 4294967295, %s1172_s23   ;;  %s883_s25 = sadd.s32 4294967294, %s1172_s23   ;;  %s1172_s23 = sphi %s1218_s23, %s18_s23   ;;  %s1168_s22 = sphi %s1216_s22, %s1498_s22   ;;  %s1164_s21 = sphi %s1214_s21, %s1497_s21   ;;  %s1160_s20 = sphi %s1212_s20, %s1496_s20   ;;  %s1156_s19 = sphi %s1210_s19, %s1495_s19   ;;  %s1152_s18 = sphi %s1208_s18, %s1494_s18  }
   0x5   : > { %s30_s26 = sadd.s32 1, %s1168_s22  ;;  %s149_s27 = sadd.s32 1, %s1160_s20 }
   0x6   : > { %p32_p0 = scmp.ge.s32.totalorder %s30_s26, 2  ;;  %p159_p1 = scmp.ne.s32.totalorder %s1160_s20, %s1156_s19 }
   0x7   : > { %p160_p2 = scmp.eq.s32.totalorder %s882_s24, 1  ;;  %p165_p3 = scmp.ne.s32.totalorder %s1156_s19, %s1152_s18 }
   0x8   : > { %s1500_s26 = smov (%p32_p0, %s30_s26), 0  ;;  %p166_p5 = scmp.eq.s32.totalorder %s883_s25, 1 }
   0x9   : > { %p1248_p4 = por %p160_p2, %p159_p1  ;;  %s146_s29 = ssub.s32 %s1168_s22, %s1500_s26 }
   0xa   : > { %p886_p6 = scmp.ge.s32.totalorder %s1172_s23, 1  ;;  %p147_p7 = scmp.eq.s32.totalorder %s146_s29, 0 }
   0xb   : > { %p1255_p8 = por %p166_p5, %p165_p3  ;;  %p209_p9 = scmp.lt.s32.totalorder %s1172_s23, 3 }
   0xc   : > { %s1261_s6 = scalar_select %p147_p7, %s1160_s20, %s149_s27  }
   0xd   : > { %p210_p10 = pnand %p886_p6, %p209_p9 }
   0xe   : > { %v1075_v0 = vld [vmem:[%s1487_s1] sm:$0xff] (!%p210_p10)   ;;  %v1076_v1 = vld [vmem:[%s1487_s1 + $0x8] sm:$0xff] (!%p210_p10)   ;;  %p241_p11 = scmp.lt.s32.totalorder (!%p210_p10), %s1164_s21, 1  ;;  %v1077_v2 = vld [vmem:[%s1487_s1 + $0x10] ss:$0 sps:$4 sm:$0x33] (!%p210_p10)  }
   0xf   : > { %213 = sbr.rel (%p210_p10) target bundleno = 562 (0x232), region = 40  ;;  %954 = vmatprep.subr.bf16.mxu0 (!%p210_p10), %v1075_v0  ;;  %1009 = vmatprep.subr.bf16.mxu1 (!%p210_p10), %v1075_v0  ;;  %vm445_vm0 = vcmask (!%p210_p10), 1041408   ;;  %vm396_vm1 = vcmask (!%p210_p10), 293888   ;;  %vm255_vm2 = vcmask (!%p210_p10), 253952   ;;  %v1174_v20 = vmov (!%p210_p10), 0.0   ;;  %v721_v21 = vld [vmem:[%s1489_s3] sm:$0xff] (!%p210_p10) }
  0x10   : > { %955 = vmatpush3.bf16.msra.mxu0 (!%p210_p10), %v1075_v0  ;;  %1012 = vmatpush3.bf16.msra.mxu1 (!%p210_p10), %v1075_v0  ;;  %v447_v4 = vsel (!%p210_p10), %vm445_vm0, %v1077_v2, 0  ;;  %256 = vst.msk [vmem:[#allocation2] sm:$0x1] (!%p210_p10), %vm255_vm2, %v1174_v20  ;;  %v722_v22 = vld [vmem:[%s1489_s3 + $0x8] sm:$0xff] (!%p210_p10)  ;;  %v723_v23 = vld [vmem:[%s1489_s3 + $0x10] sm:$0xff] (!%p210_p10)  ;;  %v1175_v24 = vmov (!%p210_p10), 0.0|0.0  }
  0x11   : > { %956 = vmatprep.subr.bf16.mxu0 (!%p210_p10), %v1076_v1  ;;  %1010 = vmatprep.subr.bf16.mxu1 (!%p210_p10), %v1076_v1  ;;  %v1004_v25 = vpack.c.bf16 (!%p210_p10), %v722_v22, %v721_v21  ;;  %v724_v26 = vld [vmem:[%s1489_s3 + $0x18] sm:$0xff] (!%p210_p10)  ;;  %vm1176_vm3 = vmmov (!%p210_p10), 0   ;;  %v1327_v28 = vld [vmem:[%s1488_s2] ss:$0 sm:$0xff] (!%p210_p10)  ;;  %vm643_vm4 = vcmask (!%p210_p10), 261120   ;;  %s238_s13 = sand.u32 (!%p210_p10), 1, %s1156_s19  }
  0x12   : > { %v1007_v27 = vpack.c.bf16 (!%p210_p10), %v724_v26, %v723_v23  ;;  %s926_s16 = sshll.u32 (!%p210_p10), %s1164_s21, 4  ;;  %s801_s7 = scalar_lea.sflag (!%p210_p10), [#allocation4], %s238_s13 }
  0x13   : > { %s1439_s29 = scalar_lea.hbm (!%p210_p10), %s1491_s5, %s926_s16 }
  0x14   : > { %957 = vmatpush3.bf16.msra.mxu0 (!%p210_p10), %v1076_v1  ;;  %1013 = vmatpush3.bf16.msra.mxu1 (!%p210_p10), %v1076_v1 }
  0x15   : > { %1015 = vmatprep.subr.msk.bf16.mxu0 (!%p210_p10), %vm445_vm0, %v1077_v2  ;;  %1016 = vmatprep.subr.msk.bf16.mxu1 (!%p210_p10), %vm445_vm0, %v1077_v2 }
  0x16   : > { %s242_s11 = scalar_select %p241_p11, %s1164_s21, 1 }
  0x17   : > { %s1177_s21 = smov [#allocation3]  }
  0x18   : > { %s929_s14 = sshll.u32 %s242_s11, 7  ;;  %959 = vmatpush3.bf16.msra.mxu0 %v447_v4  ;;  %1014 = vmatpush3.bf16.msra.mxu1 %v447_v4  ;;  %s1098_s9 = sshll.u32 %s1177_s21, 4  ;;  %s1099_s9 = int_to_ptr.vmem [resolvable:$false] %s1098_s9 }
  0x19   : > { %s1277_s17 = scalar_lea.vmem %s1486_s0, %s929_s14  ;;  %1003 = vmatprep.subr.bf16.mxu1 %v1175_v24  ;;  %s1100_s10 = scalar_lea.vmem %s1099_s9, 32 }
  0x1a   : > { %v1078_v3 = vld [vmem:[%s1277_s17] sm:$0xff]   ;;  %v1079_v5 = vld [vmem:[%s1277_s17 + $0x8] sm:$0xff]   ;;  %v1080_v6 = vld [vmem:[%s1277_s17 + $0x10] sm:$0xff]  }
  0x1b   : > { %960 = vmatprep.mubr.msk.bf16.mxu0 %vm396_vm1, %v1078_v3  ;;  %v1081_v7 = vld [vmem:[%s1277_s17 + $0x18] sm:$0xff]   ;;  %v1082_v8 = vld [vmem:[%s1277_s17 + $0x20] sm:$0xff]   ;;  %v1088_v9 = vld [vmem:[%s1277_s17 + $0x50] sm:$0xff]  }
  0x1c   : > { %961 = vmatmul.mubr.msk.bf16.vlgmr.msra.gmra.mrb[0].mxu0 %vm396_vm1, %v1079_v5  ;;  %v1089_v10 = vld [vmem:[%s1277_s17 + $0x58] sm:$0xff]   ;;  %980 = vmatprep.mubr.msk.bf16.mxu1 %vm396_vm1, %v1088_v9  ;;  %v1090_v11 = vld [vmem:[%s1277_s17 + $0x60] sm:$0xff]   ;;  %v1091_v12 = vld [vmem:[%s1277_s17 + $0x68] sm:$0xff]  }
  0x1d   : > { %964 = vmatprep.mubr.msk.bf16.mxu0 %vm396_vm1, %v1080_v6  ;;  %981 = vmatmul.mubr.msk.bf16.vlgmr.msra.gmra.mrb[0].mxu1 %vm396_vm1, %v1089_v10  ;;  %v1092_v13 = vld [vmem:[%s1277_s17 + $0x70] sm:$0xff]   ;;  %v1083_v14 = vld [vmem:[%s1277_s17 + $0x28] sm:$0xff]   ;;  %v1093_v16 = vld [vmem:[%s1277_s17 + $0x78] sm:$0xff]  }
  0x1e   : > { %984 = vmatprep.mubr.msk.bf16.mxu1 %vm396_vm1, %v1090_v11  ;;  %v1084_v15 = vld [vmem:[%s1277_s17 + $0x30] sm:$0xff]   ;;  %v1085_v17 = vld [vmem:[%s1277_s17 + $0x38] sm:$0xff]   ;;  %v1086_v18 = vld [vmem:[%s1277_s17 + $0x40] sm:$0xff]   ;;  %1005 = vmatpush3.bf16.msra.mxu1 %v1004_v25 }
  0x1f   : > { %v1087_v19 = vld [vmem:[%s1277_s17 + $0x48] sm:$0xff]   ;;  %1006 = vmatprep.subr.bf16.mxu1 %v1175_v24  ;;  %s239_s17 = scalar_lea.vmem [#allocation3], %s238_s13 }
  0x20   : > { %s813_s24 = sshll.u32 %s239_s17, 4  ;;  %s1441_s24 = int_to_ptr.vmem [resolvable:$true] %s813_s24 }
  0x21   : > { %s1094_s8 = scalar_lea.vmem %s1441_s24, 16  ;;  %p1101_p1 = scmp.lt.s32.totalorder %s1441_s24, %s1099_s9 }
  0x22   : > { %1008 = vmatpush3.bf16.msra.mxu1 %v1007_v27  ;;  %p1095_p12 = scmp.ne.s32.totalorder %s1441_s24, %s1094_s8  ;;  %p1102_p2 = scmp.lt.s32.totalorder %s1100_s10, %s1094_s8 }
  0x24   : > { %965 = vmatmul.mubr.msk.bf16.gmra.mrb[4].mxu0 %vm396_vm1, %v1081_v7  ;;  %p1096_p13 = pnand %p1095_p12, %p1248_p4  ;;  %p1103_p3 = por %p1102_p2, %p1101_p1 }
  0x25   : > { %968 = vmatprep.mubr.msk.bf16.mxu0 %vm396_vm1, %v1082_v8  ;;  %985 = vmatmul.mubr.msk.bf16.gmra.mrb[4].mxu1 %vm396_vm1, %v1091_v12 }
  0x26   : > { %988 = vmatprep.mubr.msk.bf16.mxu1 %vm396_vm1, %v1092_v13  ;;  %p1097_p0 = pneg %p1096_p13 }
  0x28   : > { %p1104_p5 = pnand %p1103_p3, %p1097_p0 }
  0x2c   : > { %969 = vmatmul.mubr.msk.bf16.gmra.mrb[8].mxu0 %vm396_vm1, %v1083_v14 }
  0x2d   : > { %972 = vmatprep.mubr.msk.bf16.mxu0 %vm396_vm1, %v1084_v15  ;;  %989 = vmatmul.mubr.msk.bf16.gmra.mrb[8].mxu1 %vm396_vm1, %v1093_v16 }
  0x2e   : > { %1000 = vmatprep.mubr.msk.f32.mxu1 %vm1176_vm3, %v1174_v20 }
  0x34   : > { %973 = vmatmul.mubr.msk.bf16.gmra.mrb[12].mxu0 %vm396_vm1, %v1085_v17 }
  0x35   : > { %976 = vmatprep.mubr.msk.bf16.mxu0 %vm396_vm1, %v1086_v18 }
  0x3c   : > { %977 = vmatmul.mubr.msk.bf16.gmra.mrb[16].mxu0 %vm396_vm1, %v1087_v19 }
  0xef   : > { %v962_v29 = vpop.f32.mrb[0].mxu0 }
  0xf0   : > { %v483_v30 = vpop.f32.mrb[1].mxu0  ;;  %v492_v31 = vadd.f32 %v962_v29, %v1327_v28  ;;  %v1333_v40 = vpop.f32.mrb[0].mxu1 }
  0xf1   : > { %v484_v32 = vadd.f32 %v1327_v28, %v483_v30  ;;  %v963_v33 = vpop.f32.mrb[2].mxu0  ;;  %v1335_v41 = vpop.f32.mrb[1].mxu1 }
  0xf2   : > { %v486_v34 = vpop.f32.mrb[3].mxu0  ;;  %v495_v36 = vadd.f32 %v963_v33, %v1327_v28  ;;  %v612_v38 = vmax.f32 %v492_v31, 0.0  ;;  %v1339_v46 = vpop.f32.mrb[2].mxu1 }
  0xf3   : > { %v610_v35 = vmax.f32 %v484_v32, 0.0  ;;  %v487_v37 = vadd.f32 %v1327_v28, %v486_v34  ;;  %v1341_v49 = vpop.f32.mrb[3].mxu1 }
  0xf4   : > { %v613_v43 = vmax.f32 %v495_v36, 0.0  ;;  %v647_v50 = vsel %vm643_vm4, %v612_v38, 0.0 }
  0xf5   : > { %v611_v39 = vmax.f32 %v487_v37, 0.0  ;;  %v644_v42 = vsel %vm643_vm4, %v610_v35, 0.0 }
  0xf6   : > { %v649_v56 = vsel %vm643_vm4, %v613_v43, 0.0 }
  0xf7   : > { %v645_v44 = vsel %vm643_vm4, %v611_v39, 0.0  ;;  %v966_v45 = vpop.f32.mrb[4].mxu0 }
  0xf8   : > { %v646_v47 = vadd.f32 %v645_v44, %v644_v42  ;;  %v499_v48 = vpop.f32.mrb[5].mxu0  ;;  %v508_v51 = vadd.f32 %v966_v45, %v1327_v28  ;;  %v1350_v0 = vpop.f32.mrb[4].mxu1 }
  0xf9   : > { %v500_v52 = vadd.f32 %v1327_v28, %v499_v48  ;;  %v967_v53 = vpop.f32.mrb[6].mxu0  ;;  %v1352_v2 = vpop.f32.mrb[5].mxu1 }
  0xfa   : > { %v648_v54 = vadd.f32 %v647_v50, %v646_v47  ;;  %v502_v55 = vpop.f32.mrb[7].mxu0  ;;  %v511_v58 = vadd.f32 %v967_v53, %v1327_v28  ;;  %v616_v61 = vmax.f32 %v508_v51, 0.0  ;;  %v1355_v6 = vpop.f32.mrb[6].mxu1 }
  0xfb   : > { %v614_v57 = vmax.f32 %v500_v52, 0.0  ;;  %v503_v59 = vadd.f32 %v1327_v28, %v502_v55  ;;  %v1357_v9 = vpop.f32.mrb[7].mxu1 }
  0xfc   : > { %v650_v60 = vadd.f32 %v649_v56, %v648_v54  ;;  %v617_v3 = vmax.f32 %v511_v58, 0.0  ;;  %v655_v10 = vsel %vm643_vm4, %v616_v61, 0.0 }
  0xfd   : > { %v651_v62 = vsel %vm643_vm4, %v614_v57, 0.0  ;;  %v615_v63 = vmax.f32 %v503_v59, 0.0 }
  0xfe   : > { %v652_v1 = vadd.f32 %v651_v62, %v650_v60  ;;  %v657_v16 = vsel %vm643_vm4, %v617_v3, 0.0  ;;  %v564_v3 = vadd.f32 %v1327_v28, %v1335_v41  ;;  %v567_v41 = vadd.f32 %v1327_v28, %v1341_v49 }
  0xff   : > { %v653_v4 = vsel %vm643_vm4, %v615_v63, 0.0  ;;  %v970_v5 = vpop.f32.mrb[8].mxu0 }
 0x100   : > { %v654_v7 = vadd.f32 %v653_v4, %v652_v1  ;;  %v515_v8 = vpop.f32.mrb[9].mxu0  ;;  %v524_v11 = vadd.f32 %v970_v5, %v1327_v28  ;;  %v1366_v24 = vpop.f32.mrb[8].mxu1 }
 0x101   : > { %v516_v12 = vadd.f32 %v1327_v28, %v515_v8  ;;  %v971_v13 = vpop.f32.mrb[10].mxu0  ;;  %v1368_v26 = vpop.f32.mrb[9].mxu1 }
 0x102   : > { %v656_v14 = vadd.f32 %v655_v10, %v654_v7  ;;  %v518_v15 = vpop.f32.mrb[11].mxu0  ;;  %v527_v18 = vadd.f32 %v971_v13, %v1327_v28  ;;  %v620_v21 = vmax.f32 %v524_v11, 0.0  ;;  %v1371_v31 = vpop.f32.mrb[10].mxu1 }
 0x103   : > { %v618_v17 = vmax.f32 %v516_v12, 0.0  ;;  %v519_v19 = vadd.f32 %v1327_v28, %v518_v15  ;;  %v1373_v34 = vpop.f32.mrb[11].mxu1 }
 0x104   : > { %v658_v20 = vadd.f32 %v657_v16, %v656_v14  ;;  %v621_v27 = vmax.f32 %v527_v18, 0.0  ;;  %v663_v35 = vsel %vm643_vm4, %v620_v21, 0.0 }
 0x105   : > { %v659_v22 = vsel %vm643_vm4, %v618_v17, 0.0  ;;  %v619_v23 = vmax.f32 %v519_v19, 0.0  ;;  %v630_v17 = vmax.f32 %v564_v3, 0.0 }
 0x106   : > { %v660_v25 = vadd.f32 %v659_v22, %v658_v20  ;;  %v665_v43 = vsel %vm643_vm4, %v621_v27, 0.0  ;;  %v572_v20 = vadd.f32 %v1333_v40, %v1327_v28  ;;  %v575_v22 = vadd.f32 %v1339_v46, %v1327_v28 }
 0x107   : > { %v661_v29 = vsel %vm643_vm4, %v619_v23, 0.0  ;;  %v974_v30 = vpop.f32.mrb[12].mxu0  ;;  %v631_v27 = vmax.f32 %v567_v41, 0.0  ;;  %v583_v40 = vadd.f32 %v1327_v28, %v1357_v9 }
 0x108   : > { %v662_v32 = vadd.f32 %v661_v29, %v660_v25  ;;  %v531_v33 = vpop.f32.mrb[13].mxu0  ;;  %v540_v36 = vadd.f32 %v974_v30, %v1327_v28  ;;  %v683_v25 = vsel %vm643_vm4, %v630_v17, 0.0  ;;  %v580_v29 = vadd.f32 %v1327_v28, %v1352_v2 }
 0x109   : > { %v532_v37 = vadd.f32 %v1327_v28, %v531_v33  ;;  %v975_v38 = vpop.f32.mrb[14].mxu0  ;;  %v632_v49 = vmax.f32 %v572_v20, 0.0  ;;  %v633_v33 = vmax.f32 %v575_v22, 0.0 }
 0x10a   : > { %v664_v39 = vadd.f32 %v663_v35, %v662_v32  ;;  %v534_v42 = vpop.f32.mrb[15].mxu0  ;;  %v543_v45 = vadd.f32 %v975_v38, %v1327_v28  ;;  %v624_v50 = vmax.f32 %v540_v36, 0.0  ;;  %v685_v35 = vsel %vm643_vm4, %v631_v27, 0.0 }
 0x10b   : > { %v622_v44 = vmax.f32 %v532_v37, 0.0  ;;  %v535_v47 = vadd.f32 %v1327_v28, %v534_v42  ;;  %v634_v36 = vmax.f32 %v580_v29, 0.0  ;;  %v687_v46 = vsel %vm643_vm4, %v632_v49, 0.0 }
 0x10c   : > { %v666_v48 = vadd.f32 %v665_v43, %v664_v39  ;;  %v625_v54 = vmax.f32 %v543_v45, 0.0  ;;  %v671_v59 = vsel %vm643_vm4, %v624_v50, 0.0  ;;  %v588_v38 = vadd.f32 %v1350_v0, %v1327_v28 }
 0x10d   : > { %v667_v51 = vsel %vm643_vm4, %v622_v44, 0.0  ;;  %v623_v52 = vmax.f32 %v535_v47, 0.0  ;;  %v689_v39 = vsel %vm643_vm4, %v633_v33, 0.0  ;;  %v691_v2 = vsel %vm643_vm4, %v634_v36, 0.0 }
 0x10e   : > { %v668_v53 = vadd.f32 %v667_v51, %v666_v48  ;;  %v673_v4 = vsel %vm643_vm4, %v625_v54, 0.0  ;;  %v591_v43 = vadd.f32 %v1355_v6, %v1327_v28  ;;  %v635_v44 = vmax.f32 %v583_v40, 0.0 }
 0x10f   : > { %v669_v55 = vsel %vm643_vm4, %v623_v52, 0.0  ;;  %v978_v56 = vpop.f32.mrb[16].mxu0  ;;  %v596_v45 = vadd.f32 %v1327_v28, %v1368_v26  ;;  %v636_v9 = vmax.f32 %v588_v38, 0.0  ;;  %v599_v0 = vadd.f32 %v1327_v28, %v1373_v34 }
 0x110   : > { %v670_v57 = vadd.f32 %v669_v55, %v668_v53  ;;  %v547_v58 = vpop.f32.mrb[17].mxu0  ;;  %v556_v60 = vadd.f32 %v978_v56, %v1327_v28  ;;  %v637_v50 = vmax.f32 %v591_v43, 0.0  ;;  %v693_v51 = vsel %vm643_vm4, %v635_v44, 0.0 }
 0x111   : > { %v548_v61 = vadd.f32 %v1327_v28, %v547_v58  ;;  %v979_v62 = vpop.f32.mrb[18].mxu0  ;;  %v638_v52 = vmax.f32 %v596_v45, 0.0  ;;  %v695_v54 = vsel %vm643_vm4, %v636_v9, 0.0  ;;  %v604_v6 = vadd.f32 %v1366_v24, %v1327_v28 }
 0x112   : > { %v672_v63 = vadd.f32 %v671_v59, %v670_v57  ;;  %v550_v1 = vpop.f32.mrb[19].mxu0  ;;  %v559_v7 = vadd.f32 %v979_v62, %v1327_v28  ;;  %v628_v11 = vmax.f32 %v556_v60, 0.0  ;;  %v697_v56 = vsel %vm643_vm4, %v637_v50, 0.0 }
 0x113   : > { %v626_v5 = vmax.f32 %v548_v61, 0.0  ;;  %v551_v8 = vadd.f32 %v1327_v28, %v550_v1  ;;  %v699_v26 = vsel %vm643_vm4, %v638_v52, 0.0  ;;  %v607_v57 = vadd.f32 %v1371_v31, %v1327_v28 }
 0x114   : > { %v674_v10 = vadd.f32 %v673_v4, %v672_v63  ;;  %v629_v15 = vmax.f32 %v559_v7, 0.0  ;;  %v679_v19 = vsel %vm643_vm4, %v628_v11, 0.0  ;;  %v639_v58 = vmax.f32 %v599_v0, 0.0 }
 0x115   : > { %v675_v12 = vsel %vm643_vm4, %v626_v5, 0.0  ;;  %v627_v13 = vmax.f32 %v551_v8, 0.0  ;;  %v640_v60 = vmax.f32 %v604_v6, 0.0  ;;  %v641_v62 = vmax.f32 %v607_v57, 0.0 }
 0x116   : > { %v676_v14 = vadd.f32 %v675_v12, %v674_v10  ;;  %v681_v23 = vsel %vm643_vm4, %v629_v15, 0.0  ;;  %v701_v34 = vsel %vm643_vm4, %v639_v58, 0.0  ;;  %v642_v10 = vld [vmem:[#allocation2] sm:$0x1] }
 0x117   : > { %v677_v16 = vsel %vm643_vm4, %v627_v13, 0.0  ;;  %v703_v1 = vsel %vm643_vm4, %v640_v60, 0.0  ;;  %v705_v3 = vsel %vm643_vm4, %v641_v62, 0.0  ;;  %v725_v15 = vld [vmem:[%s1490_s4] sm:$0x1] }
 0x118   : > { %v678_v18 = vadd.f32 %v677_v16, %v676_v14 }
 0x11a   : > { %v680_v21 = vadd.f32 %v679_v19, %v678_v18 }
 0x11c   : > { %v682_v30 = vadd.f32 %v681_v23, %v680_v21 }
 0x11e   : > { %v684_v32 = vadd.f32 %v683_v25, %v682_v30 }
 0x120   : > { %v686_v37 = vadd.f32 %v685_v35, %v684_v32 }
 0x122   : > { %v688_v42 = vadd.f32 %v687_v46, %v686_v37 }
 0x124   : > { %v690_v47 = vadd.f32 %v689_v39, %v688_v42 }
 0x126   : > { %v692_v48 = vadd.f32 %v691_v2, %v690_v47 }
 0x128   : > { %v694_v53 = vadd.f32 %v693_v51, %v692_v48 }
 0x12a   : > { %v696_v55 = vadd.f32 %v695_v54, %v694_v53 }
 0x12c   : > { %v698_v59 = vadd.f32 %v697_v56, %v696_v55 }
 0x12e   : > { %v700_v61 = vadd.f32 %v699_v26, %v698_v59 }
 0x130   : > { %v702_v63 = vadd.f32 %v701_v34, %v700_v61 }
 0x132   : > { %v704_v24 = vadd.f32 %v703_v1, %v702_v63 }
 0x134   : > { %v706_v4 = vadd.f32 %v705_v3, %v704_v24 }
 0x136   : > { %v707_v5 = vrot.slane %v706_v4, 4 }
 0x138   : > { %v708_v7 = vadd.f32 %v707_v5, %v706_v4 }
 0x13a   : > { %v709_v8 = vrot.slane %v708_v7, 2 }
 0x13c   : > { %v710_v28 = vadd.f32 %v709_v8, %v708_v7 }
 0x13e   : > { %v711_v31 = vrot.slane %v710_v28, 1 }
 0x140   : > { %v712_v11 = vadd.f32 %v711_v31, %v710_v28 }
 0x142   : > { %v713_v12 = vadd.f32 %v712_v11, %v642_v10 }
 0x144   : > { %715 = vst.msk [vmem:[#allocation2] sm:$0x1] %vm255_vm2, %v713_v12 }
 0x14b   : > { %v719_v13 = vld [vmem:[#allocation2] sm:$0x1] }
 0x14c   : > { %v720_v14 = vmul.f32 0.00390625, %v719_v13 }
 0x14e   : > { %1001 = vmatmul.mubr.msk.f32.vlgmr.msra.gmra.mrb[12].mxu1 %vm643_vm4, %v720_v14 }
 0x221   : > { %v795_v16 = vpop.f32.mrb[12].mxu1 }
 0x222   : > { %v796_v17 = vadd.f32 %v795_v16, %v725_v15  ;;  %v1002_v41 = vpop.f32.mrb[13].mxu1 }
 0x224   : > { %799 = vst [vmem:[%s239_s17] sm:$0x1] %v796_v17 }
 0x225   : > { %1107 = shalt.err (!%p1104_p5)
}
 0x226   : > { %s1108_s11 = scalar_lea.hbm %s1439_s29, 16  ;;  %s1112_s14 = scalar_lea.hbm %s1491_s5, 32 }
 0x227   : > { %p1109_p6 = scmp.ne.s32.totalorder %s1439_s29, %s1108_s11  ;;  %p1113_p10 = scmp.lt.u32.totalorder %s1439_s29, %s1491_s5 }
 0x228   : > { %p1114_p11 = scmp.lt.u32.totalorder %s1112_s14, %s1108_s11  ;;  %p1116_p13 = scmp.lt.u32.totalorder %s1108_s11, %s1439_s29 }
 0x229   : > { %p1110_p7 = pnand %p1109_p6, %p1248_p4 }
 0x22a   : > { %p1115_p12 = por %p1114_p11, %p1113_p10 }
 0x22b   : > { %p1111_p9 = pneg %p1110_p7 }
 0x22c   : > { %p1117_p0 = por %p1116_p13, %p1115_p12 }
 0x22e   : > { %p1118_p1 = pnand %p1117_p0, %p1111_p9 }
 0x230   : > { %1121 = shalt.err (!%p1118_p1)
}
 0x231   : > { %1017 = dma.vmem_to_hbm [thread:$0]  (%p1248_p4), %s1441_s24, 16, %s1439_s29, %s801_s7  }
 0x232 PF: > { %p1023_p2 = scmp.ge.s32.totalorder %s1172_s23, 2  ;;  %s825_s17 = sand.u32 1, %s1152_s18  }
 0x233   : > { %s826_s25 = scalar_lea.sflag [#allocation4], %s825_s17 }
 0x234   : > { %p1020_p3 = pnand %p1023_p2, %p1255_p8 }
 0x236   : > { %1147 = dma.done.wait (!%p1020_p3), %s826_s25, 16  }
 0x237   : > { %1149 = vsyncadd (!%p1020_p3), %s826_s25, 4294967280  ;;  %s18_s23 = sadd.s32 1, %s1172_s23   ;;  %s1494_s18 = smov %s1156_s19 }
 0x238   : > { %p15_p5 = scmp.ge.s32.totalorder %s18_s23, 4   ;;  %s1495_s19 = smov %s1160_s20 }
 0x239   : > { %s1496_s20 = smov %s1261_s6  ;;  %s1497_s21 = smov %s1168_s22 }
 0x23a   : > { %s1498_s22 = smov %s1500_s26  ;;  %17 = sbr.rel (!%p15_p5) target bundleno = 4 (0x4), region = 83 }
 0x241   :  { %830 = vsyncpa [#allocation4], 1 }
 0x242   :  { %832 = vsyncpa [#allocation4 + $0x1], 1 }

</bundles_post_ra>
